<compile_context>
chip_gen: v7x
topology: tpu7x:2x2x1
jax: 0.10.0
libtpu: 0.0.40
codegen_flags: <defaults>
</compile_context>

<pallas_src>
import functools

import jax
import jax.numpy as jnp
from jax.experimental import pallas as pl
from jax.experimental.pallas import tpu as pltpu


def _round_up(x, m):
    return ((x + m - 1) // m) * m


def _actor_kernel(compute_dtype,
                  x_ref, w1_ref, w2_ref, wmu_ref, b1_ref, b2_ref, bmu_ref,
                  mu_ref):
    # encoder layer 1: Linear + ReLU (f32 accumulation on the MXU)
    h = jnp.dot(x_ref[...], w1_ref[...],
                preferred_element_type=jnp.float32) + b1_ref[...]
    h = jnp.maximum(h, 0.0)

    # encoder layer 2: Linear + ReLU
    h = jnp.dot(h.astype(compute_dtype), w2_ref[...],
                preferred_element_type=jnp.float32) + b2_ref[...]
    h = jnp.maximum(h, 0.0)

    # mu head
    mu = jnp.dot(h.astype(compute_dtype), wmu_ref[...],
                 preferred_element_type=jnp.float32) + bmu_ref[...]
    mu_ref[...] = mu.astype(mu_ref.dtype)


def prepare_params(params, compute_dtype=jnp.bfloat16):
    """One-time pre-cast / pre-compute of parameters (do NOT redo per call)."""
    w1, b1, w2, b2, wmu, bmu, log_sigma = params
    return {
        "w1": jnp.asarray(w1, compute_dtype),
        "w2": jnp.asarray(w2, compute_dtype),
        "wmu": jnp.asarray(wmu, compute_dtype),
        # biases are added after f32 accumulation -> keep them f32
        "b1": jnp.asarray(b1, jnp.float32),
        "b2": jnp.asarray(b2, jnp.float32),
        "bmu": jnp.asarray(bmu, jnp.float32),
        # sigma = exp(log_sigma) broadcast over batch: batch-independent,
        # compute the exp exactly once here.
        "sigma_row": jnp.exp(jnp.asarray(log_sigma, jnp.float32)),
        "compute_dtype": compute_dtype,
    }


def continuous_actor_forward(x, prepared, *, block_b=2048):
    """x: (B, input_dim). Returns {'mu': (B, out), 'sigma': (B, out)} (f32)."""
    cd = prepared["compute_dtype"]
    w1, w2, wmu = prepared["w1"], prepared["w2"], prepared["wmu"]
    b1, b2, bmu = prepared["b1"], prepared["b2"], prepared["bmu"]

    B, input_dim = x.shape
    h1 = w1.shape[1]
    h2 = w2.shape[1]
    out_dim = wmu.shape[1]
    itemsize = jnp.dtype(cd).itemsize

    # x is the only batch-scaled input stream; cast once (no-op if already cd).
    xk = x.astype(cd)

    # --- batch tiling -------------------------------------------------------
    # B <= 16: single full-array block (block == full dims satisfies the
    # (8,128) rule even if B is not a multiple of 8).
    # B > 16: pick an EVEN number of grid steps (>= 2) so v7x can split rows
    # across both TensorCores, with each tile capped near block_b (amortizes
    # the fixed per-step pipeline overhead). tb stays a multiple of 8.
    if B <= 16:
        tb = B
    else:
        n_steps = max(2, 2 * pl.cdiv(B, 2 * block_b))
        tb = _round_up(pl.cdiv(B, n_steps), 8)
    grid = (pl.cdiv(B, tb),)   # non-divisible last block is masked by Pallas

    # --- compiler params ----------------------------------------------------
    compiler_kwargs = {"dimension_semantics": ("parallel",)}
    # Lane-padded, double-buffered x/mu streams only threaten v5e's 16 MiB
    # default scoped VMEM for very large tiles; raise the limit only then.
    stream_bytes = 2 * tb * (_round_up(input_dim, 128) * itemsize
                             + _round_up(out_dim, 128) * 4)
    if stream_bytes > 12 * 1024 * 1024:
        compiler_kwargs["vmem_limit_bytes"] = min(stream_bytes + (8 << 20),
                                                  48 << 20)

    # --- cost estimate (advisory, lets XLA schedule around this tiny call) ---
    flops = 2 * B * (input_dim * h1 + h1 * h2 + h2 * out_dim)
    bytes_accessed = (B * input_dim * itemsize          # x streamed in
                      + B * out_dim * 4                 # mu streamed out
                      + (input_dim * h1 + h1 * h2 + h2 * out_dim) * itemsize
                      + (h1 + h2 + out_dim) * 4)        # weights+biases (once)
    cost = pl.CostEstimate(flops=flops, transcendentals=0,
                           bytes_accessed=bytes_accessed)

    kernel = functools.partial(_actor_kernel, cd)

    mu = pl.pallas_call(
        kernel,
        out_shape=jax.ShapeDtypeStruct((B, out_dim), jnp.float32),
        grid_spec=pltpu.PrefetchScalarGridSpec(
            num_scalar_prefetch=0,
            grid=grid,
            in_specs=[
                pl.BlockSpec((tb, input_dim), lambda i: (i, 0)),   # x: streamed
                pl.BlockSpec((input_dim, h1), lambda i: (0, 0)),   # weights:
                pl.BlockSpec((h1, h2), lambda i: (0, 0)),          #   VMEM-
                pl.BlockSpec((h2, out_dim), lambda i: (0, 0)),     #   resident
                pl.BlockSpec((1, h1), lambda i: (0, 0)),           # biases:
                pl.BlockSpec((1, h2), lambda i: (0, 0)),           #   separate,
                pl.BlockSpec((1, out_dim), lambda i: (0, 0)),      #   lane-0 aligned
            ],
            out_specs=pl.BlockSpec((tb, out_dim), lambda i: (i, 0)),
        ),
        compiler_params=pltpu.CompilerParams(**compiler_kwargs),
        cost_estimate=cost,
    )(xk, w1, w2, wmu, b1, b2, bmu)

    # sigma = exp(log_sigma + zeros_like(mu)) == broadcast(exp(log_sigma)).
    sigma = jnp.broadcast_to(prepared["sigma_row"], mu.shape)
    return {"mu": mu, "sigma": sigma}


def init_params(key, input_dim, hidden_sizes, output_dim):
    """Synthetic init mirroring torch nn.Linear parameter shapes.

    torch Linear stores W as (out, in); we transpose to (in, out) for the kernel.
    """
    h1, h2 = hidden_sizes
    keys = jax.random.split(key, 6)

    def lin(kw, kb, fan_in, fan_out):
        bound = 1.0 / jnp.sqrt(fan_in)
        w = jax.random.uniform(kw, (fan_out, fan_in), jnp.float32, -bound, bound)
        b = jax.random.uniform(kb, (fan_out,), jnp.float32, -bound, bound)
        return w.T, b.reshape(1, fan_out)  # (in, out), (1, out)

    w1, b1 = lin(keys[0], keys[1], input_dim, h1)
    w2, b2 = lin(keys[2], keys[3], h1, h2)
    wmu, bmu = lin(keys[4], keys[5], h2, output_dim)
    log_sigma = jnp.zeros((1, output_dim), jnp.float32)  # nn.Parameter(zeros(1, out))
    return (w1, b1, w2, b2, wmu, bmu, log_sigma)


def reference_forward(x, params):
    w1, b1, w2, b2, wmu, bmu, log_sigma = params
    h = jnp.maximum(x @ w1 + b1, 0.0)
    h = jnp.maximum(h @ w2 + b2, 0.0)
    mu = h @ wmu + bmu
    sigma = jnp.exp(log_sigma + jnp.zeros_like(mu))
    return {"mu": mu, "sigma": sigma}


if __name__ == "__main__":
    # Small shapes consistent with the module (activation = ReLU).
    batch, input_dim, hidden_sizes, output_dim = 2, 16, [32, 32], 4

    key = jax.random.PRNGKey(0)
    k_x, k_p, k_x2 = jax.random.split(key, 3)
    x = jax.random.normal(k_x, (batch, input_dim), jnp.float32)
    params = init_params(k_p, input_dim, hidden_sizes, output_dim)
    ref = reference_forward(x, params)

    # f32 operand path (exact against reference), single full-array block.
    p_f32 = prepare_params(params, compute_dtype=jnp.float32)
    out = continuous_actor_forward(x, p_f32)
    jax.block_until_ready(out)
    assert out["mu"].shape == (batch, output_dim)
    assert out["sigma"].shape == (batch, output_dim)
    assert jnp.allclose(out["mu"], ref["mu"], atol=1e-5, rtol=1e-5)
    assert jnp.allclose(out["sigma"], ref["sigma"], atol=1e-5, rtol=1e-5)

    # Default bf16 streaming path (v6e/v7x-native MXU operands, f32 accum).
    p_bf16 = prepare_params(params)
    out_bf = continuous_actor_forward(x, p_bf16)
    jax.block_until_ready(out_bf)
    assert jnp.allclose(out_bf["mu"], ref["mu"], atol=3e-2, rtol=3e-2)
    assert jnp.allclose(out_bf["sigma"], ref["sigma"], atol=3e-2, rtol=3e-2)

    # Larger ragged batch: >=2 grid steps (v7x uses both TCs) and a partial
    # last block masked by Pallas (no wrapper-side pad / extra HBM pass).
    x_big = jax.random.normal(k_x2, (300, input_dim), jnp.float32)
    ref_big = reference_forward(x_big, params)

    out_big = continuous_actor_forward(x_big, p_f32)
    jax.block_until_ready(out_big)
    assert out_big["mu"].shape == (300, output_dim)
    assert jnp.allclose(out_big["mu"], ref_big["mu"], atol=1e-5, rtol=1e-5)
    assert jnp.allclose(out_big["sigma"], ref_big["sigma"], atol=1e-5, rtol=1e-5)

    out_big_bf = continuous_actor_forward(x_big, p_bf16)
    jax.block_until_ready(out_big_bf)
    assert jnp.allclose(out_big_bf["mu"], ref_big["mu"], atol=3e-2, rtol=3e-2)

    # TODO(synk): sample_action uses torch.distributions Normal/Independent
    # sampling (RNG draw); only the deterministic forward pass is implemented.
    print("KERNEL_OK")
</pallas_src>

<mosaic_0001>
module attributes {stable_mosaic.version = 11 : i64} {
  func.func @_actor_kernel(%arg0: i32, %arg1: memref<2x16xf32, #tpu.memory_space<vmem>>, %arg2: memref<16x32xf32, #tpu.memory_space<vmem>>, %arg3: memref<32x32xf32, #tpu.memory_space<vmem>>, %arg4: memref<32x4xf32, #tpu.memory_space<vmem>>, %arg5: memref<1x32xf32, #tpu.memory_space<vmem>>, %arg6: memref<1x32xf32, #tpu.memory_space<vmem>>, %arg7: memref<1x4xf32, #tpu.memory_space<vmem>>, %arg8: memref<2x4xf32, #tpu.memory_space<vmem>>) attributes {dimension_semantics = [#tpu.dimension_semantics<parallel>], iteration_bounds = array<i64: 1>, scalar_prefetch = 0 : i64, scratch_operands = 0 : i64, tpu.core_type = #tpu.core_type<tc>, window_params = [{transform_indices = @transform_0, window_bounds = array<i64: 2, 16>}, {pipeline_mode = #tpu.pipeline_mode<synchronous>, transform_indices = @transform_1, window_bounds = array<i64: 16, 32>}, {pipeline_mode = #tpu.pipeline_mode<synchronous>, transform_indices = @transform_2, window_bounds = array<i64: 32, 32>}, {pipeline_mode = #tpu.pipeline_mode<synchronous>, transform_indices = @transform_3, window_bounds = array<i64: 32, 4>}, {pipeline_mode = #tpu.pipeline_mode<synchronous>, transform_indices = @transform_4, window_bounds = array<i64: 1, 32>}, {pipeline_mode = #tpu.pipeline_mode<synchronous>, transform_indices = @transform_5, window_bounds = array<i64: 1, 32>}, {pipeline_mode = #tpu.pipeline_mode<synchronous>, transform_indices = @transform_6, window_bounds = array<i64: 1, 4>}, {transform_indices = @transform_7, window_bounds = array<i64: 2, 4>}]} {
    %c0 = arith.constant 0 : index
    %c0_0 = arith.constant 0 : index
    %0 = vector.load %arg1[%c0, %c0_0] : memref<2x16xf32, #tpu.memory_space<vmem>>, vector<2x16xf32>
    %c0_1 = arith.constant 0 : index
    %c0_2 = arith.constant 0 : index
    %1 = vector.load %arg2[%c0_1, %c0_2] : memref<16x32xf32, #tpu.memory_space<vmem>>, vector<16x32xf32>
    %cst = arith.constant dense<0.000000e+00> : vector<2x32xf32>
    %2 = tpu.matmul %0, %1, %cst {dimension_numbers = #tpu.dot_dimension_numbers<[1], [0], [0], [1], [0, 0, 1, 1], [], []>} : vector<2x16xf32>, vector<16x32xf32>, vector<2x32xf32> -> vector<2x32xf32>
    %c0_3 = arith.constant 0 : index
    %c0_4 = arith.constant 0 : index
    %3 = vector.load %arg5[%c0_3, %c0_4] : memref<1x32xf32, #tpu.memory_space<vmem>>, vector<1x32xf32>
    %4 = vector.broadcast %3 : vector<1x32xf32> to vector<2x32xf32>
    %5 = arith.addf %2, %4 : vector<2x32xf32>
    %cst_5 = arith.constant 0.000000e+00 : f32
    %6 = vector.broadcast %cst_5 : f32 to vector<2x32xf32>
    %7 = arith.maximumf %5, %6 : vector<2x32xf32>
    %c0_6 = arith.constant 0 : index
    %c0_7 = arith.constant 0 : index
    %8 = vector.load %arg3[%c0_6, %c0_7] : memref<32x32xf32, #tpu.memory_space<vmem>>, vector<32x32xf32>
    %cst_8 = arith.constant dense<0.000000e+00> : vector<2x32xf32>
    %9 = tpu.matmul %7, %8, %cst_8 {dimension_numbers = #tpu.dot_dimension_numbers<[1], [0], [0], [1], [0, 0, 1, 1], [], []>} : vector<2x32xf32>, vector<32x32xf32>, vector<2x32xf32> -> vector<2x32xf32>
    %c0_9 = arith.constant 0 : index
    %c0_10 = arith.constant 0 : index
    %10 = vector.load %arg6[%c0_9, %c0_10] : memref<1x32xf32, #tpu.memory_space<vmem>>, vector<1x32xf32>
    %11 = vector.broadcast %10 : vector<1x32xf32> to vector<2x32xf32>
    %12 = arith.addf %9, %11 : vector<2x32xf32>
    %cst_11 = arith.constant 0.000000e+00 : f32
    %13 = vector.broadcast %cst_11 : f32 to vector<2x32xf32>
    %14 = arith.maximumf %12, %13 : vector<2x32xf32>
    %c0_12 = arith.constant 0 : index
    %c0_13 = arith.constant 0 : index
    %15 = vector.load %arg4[%c0_12, %c0_13] : memref<32x4xf32, #tpu.memory_space<vmem>>, vector<32x4xf32>
    %cst_14 = arith.constant dense<0.000000e+00> : vector<2x4xf32>
    %16 = tpu.matmul %14, %15, %cst_14 {dimension_numbers = #tpu.dot_dimension_numbers<[1], [0], [0], [1], [0, 0, 1, 1], [], []>} : vector<2x32xf32>, vector<32x4xf32>, vector<2x4xf32> -> vector<2x4xf32>
    %c0_15 = arith.constant 0 : index
    %c0_16 = arith.constant 0 : index
    %17 = vector.load %arg7[%c0_15, %c0_16] : memref<1x4xf32, #tpu.memory_space<vmem>>, vector<1x4xf32>
    %18 = vector.broadcast %17 : vector<1x4xf32> to vector<2x4xf32>
    %19 = arith.addf %16, %18 : vector<2x4xf32>
    %c0_17 = arith.constant 0 : index
    %c0_18 = arith.constant 0 : index
    %20 = vector.load %arg8[%c0_17, %c0_18] : memref<2x4xf32, #tpu.memory_space<vmem>>, vector<2x4xf32>
    tpu.vector_store %arg8[%c0_17, %c0_18], %19 {strides = array<i32>} : memref<2x4xf32, #tpu.memory_space<vmem>>, vector<2x4xf32>,
    return
  }
  func.func @transform_0(%arg0: i32) -> (i32, i32) {
    %c0_i32 = arith.constant 0 : i32
    %c0_i32_0 = arith.constant 0 : i32
    return %arg0, %c0_i32 : i32, i32
  }
  func.func @transform_1(%arg0: i32) -> (i32, i32) {
    %c0_i32 = arith.constant 0 : i32
    %c0_i32_0 = arith.constant 0 : i32
    %c0_i32_1 = arith.constant 0 : i32
    return %c0_i32, %c0_i32_0 : i32, i32
  }
  func.func @transform_2(%arg0: i32) -> (i32, i32) {
    %c0_i32 = arith.constant 0 : i32
    %c0_i32_0 = arith.constant 0 : i32
    %c0_i32_1 = arith.constant 0 : i32
    return %c0_i32, %c0_i32_0 : i32, i32
  }
  func.func @transform_3(%arg0: i32) -> (i32, i32) {
    %c0_i32 = arith.constant 0 : i32
    %c0_i32_0 = arith.constant 0 : i32
    %c0_i32_1 = arith.constant 0 : i32
    return %c0_i32, %c0_i32_0 : i32, i32
  }
  func.func @transform_4(%arg0: i32) -> (i32, i32) {
    %c0_i32 = arith.constant 0 : i32
    %c0_i32_0 = arith.constant 0 : i32
    %c0_i32_1 = arith.constant 0 : i32
    return %c0_i32, %c0_i32_0 : i32, i32
  }
  func.func @transform_5(%arg0: i32) -> (i32, i32) {
    %c0_i32 = arith.constant 0 : i32
    %c0_i32_0 = arith.constant 0 : i32
    %c0_i32_1 = arith.constant 0 : i32
    return %c0_i32, %c0_i32_0 : i32, i32
  }
  func.func @transform_6(%arg0: i32) -> (i32, i32) {
    %c0_i32 = arith.constant 0 : i32
    %c0_i32_0 = arith.constant 0 : i32
    %c0_i32_1 = arith.constant 0 : i32
    return %c0_i32, %c0_i32_0 : i32, i32
  }
  func.func @transform_7(%arg0: i32) -> (i32, i32) {
    %c0_i32 = arith.constant 0 : i32
    %c0_i32_0 = arith.constant 0 : i32
    return %arg0, %c0_i32 : i32, i32
  }
}

</mosaic_0001>

<bundles_post_ra>
// kernel: tpu_custom_call.1
= control target key start
LH: loop header
LB: loop body
LE: loop exit
PB: predicated region body
PF: predicated region fallthrough
CT: control target
= control target key end

     0   :  { %12 = vsyncpa [#allocation3], 0  ;;  %s541_s0 = inlined_call_operand.vmem [shape: f32[2,16], index: 0, kind: input, shape index: {}]   ;;  %s542_s1 = inlined_call_operand.hbm [shape: f32[16,32], index: 1, kind: input, shape index: {}]   ;;  %s543_s2 = inlined_call_operand.vmem [shape: f32[32,32], index: 2, kind: input, shape index: {}]   ;;  %s544_s3 = inlined_call_operand.vmem [shape: f32[32,4], index: 3, kind: input, shape index: {}]   ;;  %s545_s4 = inlined_call_operand.vmem [shape: f32[1,32], index: 4, kind: input, shape index: {}]   ;;  %s546_s5 = inlined_call_operand.vmem [shape: f32[1,32], index: 5, kind: input, shape index: {}]   ;;  %s547_s6 = inlined_call_operand.vmem [shape: f32[1,4], index: 6, kind: input, shape index: {}]   ;;  %s548_s7 = inlined_call_operand.hbm [shape: f32[2,4], index: 7, kind: output, shape index: {}]  }
   0x1   :  { %13 = vsyncpa [#allocation4], 0  ;;  %s431_s24 = smov [#allocation2]   ;;  %s383_s28 = scalar_lea.hbm %s542_s1, 256 }
   0x2   :  { %s21_s25 = sshll.u32 %s431_s24, 4  ;;  %p384_p0 = scmp.ne.s32.totalorder %s542_s1, %s383_s28  ;;  %s22_s25 = int_to_ptr.vmem [resolvable:$true] %s21_s25 }
   0x3   :  { %p387_p1 = scmp.lt.u32.totalorder %s383_s28, %s542_s1 }
   0x5   :  { %p389_p2 = pnand %p387_p1, %p384_p0 }
   0x7   :  { %392 = shalt.err (!%p389_p2)
}
   0x8   :  { %s393_s10 = scalar_lea.vmem %s22_s25, 256  ;;  %p398_p4 = scmp.lt.s32.totalorder %s22_s25, %s22_s25 }
   0x9   :  { %p394_p3 = scmp.ne.s32.totalorder %s22_s25, %s393_s10  ;;  %p399_p5 = scmp.lt.s32.totalorder %s393_s10, %s393_s10 }
   0xb   :  { %p400_p6 = por %p399_p5, %p398_p4 }
   0xd   :  { %p401_p7 = pnand %p400_p6, %p394_p3 }
   0xf   :  { %404 = shalt.err (!%p401_p7)
}
  0x10   :  { %s432_s11 = smov 128   ;;  %s433_s12 = smov 8  }
  0x11   :  { %27 = dma.hbm_to_vmem [thread:$0]  %s542_s1, 256, %s22_s25, [#allocation3], %s432_s11, %s432_s11, %s433_s12  }
  0x12   :  { %427 = dma.done.wait [#allocation3], 256  }
  0x13   :  { %428 = vsyncadd [#allocation3], 4294967040  ;;  %v434_v0 = vmov 0.0|0.0   ;;  %vm435_vm0 = vmmov 0   ;;  %v436_v1 = vmov 0.0   ;;  %v42_v2 = vld [vmem:[#allocation2] sm:$0xff] }
  0x14   :  { %361 = vmatprep.subr.bf16.mxu0 %v434_v0  ;;  %336 = vmatprep.mubr.msk.f32.mxu0 %vm435_vm0, %v436_v1  ;;  %v43_v3 = vld [vmem:[#allocation2 + $0x8] sm:$0xff]  ;;  %v126_v5 = vld [vmem:[%s543_s2] sm:$0xff]  ;;  %vm51_vm1 = vcmask 130048   ;;  %v128_v9 = vld [vmem:[%s543_s2 + $0x10] sm:$0xff]  ;;  %vm137_vm2 = vcmask 261120   ;;  %s437_s12 = smov [#allocation5]  }
  0x15   :  { %364 = vmatprep.subr.bf16.mxu1 %v434_v0  ;;  %347 = vmatprep.mubr.msk.f32.mxu1 %vm435_vm0, %v436_v1  ;;  %v362_v4 = vpack.c.bf16 %v43_v3, %v42_v2  ;;  %v127_v6 = vld [vmem:[%s543_s2 + $0x8] sm:$0xff]  ;;  %v41_v8 = vld [vmem:[%s541_s0] sm:$0x3]  ;;  %v129_v10 = vld [vmem:[%s543_s2 + $0x18] sm:$0xff]  ;;  %s304_s13 = sshll.u32 %s437_s12, 4  ;;  %vm296_vm3 = vcmask 25600   ;;  %s305_s13 = int_to_ptr.vmem [resolvable:$true] %s304_s13 }
  0x16   :  { %v365_v7 = vpack.c.bf16 %v127_v6, %v126_v5  ;;  %v368_v11 = vpack.c.bf16 %v129_v10, %v128_v9  ;;  %v212_v12 = vld [vmem:[%s544_s3] sm:$0xff]  ;;  %v213_v13 = vld [vmem:[%s544_s3 + $0x8] sm:$0xff]  ;;  %v214_v20 = vld [vmem:[%s544_s3 + $0x10] sm:$0xff]  ;;  %p410_p9 = scmp.lt.s32.totalorder %s305_s13, %s305_s13 }
  0x17   :  { %363 = vmatpush3.bf16.msra.mxu0 %v362_v4  ;;  %v371_v14 = vpack.c.bf16 %v213_v13, %v212_v12  ;;  %v313_v15 = vld [vmem:[%s545_s4] ss:$0 sm:$0xff]  ;;  %v215_v21 = vld [vmem:[%s544_s3 + $0x18] sm:$0xff]  ;;  %s405_s3 = scalar_lea.vmem %s305_s13, 32 }
  0x18   :  { %366 = vmatpush3.bf16.msra.mxu1 %v365_v7  ;;  %370 = vmatprep.subr.bf16.mxu0 %v434_v0  ;;  %v374_v22 = vpack.c.bf16 %v215_v21, %v214_v20  ;;  %v315_v23 = vld [vmem:[%s546_s5] ss:$0 sm:$0xff]  ;;  %p406_p8 = scmp.ne.s32.totalorder %s305_s13, %s405_s3  ;;  %p411_p10 = scmp.lt.s32.totalorder %s405_s3, %s405_s3 }
  0x19   :  { %367 = vmatprep.subr.bf16.mxu1 %v434_v0  ;;  %v317_v28 = vld [vmem:[%s547_s6] ss:$0 sm:$0xff] }
  0x1a   :  { %337 = vmatmul.mubr.msk.f32.vlgmr.msra.gmra.mrb[0].mxu0 %vm51_vm1, %v41_v8  ;;  %p412_p11 = por %p411_p10, %p410_p9 }
  0x1b   :  { %358 = vmatprep.mubr.msk.f32.mxu0 %vm435_vm0, %v436_v1  ;;  %372 = vmatpush3.bf16.msra.mxu0 %v371_v14 }
  0x1c   :  { %369 = vmatpush3.bf16.msra.mxu1 %v368_v11  ;;  %373 = vmatprep.subr.bf16.mxu0 %v434_v0  ;;  %p413_p12 = pnand %p412_p11, %p406_p8 }
  0x1f   :  { %375 = vmatpush3.bf16.msra.mxu0 %v374_v22 }
  0xed   :  { %v121_v16 = vpop.f32.mrb[0].mxu0 }
  0xee   :  { %v122_v17 = vadd.f32 %v313_v15, %v121_v16  ;;  %v338_v18 = vpop.f32.mrb[1].mxu0 }
  0xf0   :  { %v125_v19 = vmax.f32 %v122_v17, 0.0 }
  0xf2   :  { %348 = vmatmul.mubr.msk.f32.vlgmr.msra.gmra.mrb[0].mxu1 %vm137_vm2, %v125_v19 }
 0x1c5   :  { %v207_v24 = vpop.f32.mrb[0].mxu1 }
 0x1c6   :  { %v208_v25 = vadd.f32 %v315_v23, %v207_v24  ;;  %v349_v26 = vpop.f32.mrb[1].mxu1 }
 0x1c8   :  { %v211_v27 = vmax.f32 %v208_v25, 0.0 }
 0x1ca   :  { %359 = vmatmul.mubr.msk.f32.vlgmr.msra.gmra.mrb[2].mxu0 %vm137_vm2, %v211_v27 }
 0x29d   :  { %v292_v29 = vpop.f32.mrb[2].mxu0 }
 0x29e   :  { %v293_v30 = vadd.f32 %v317_v28, %v292_v29  ;;  %v360_v31 = vpop.f32.mrb[3].mxu0 }
 0x2a0   :  { %297 = vst.msk [vmem:[#allocation5] sm:$0x3] %vm296_vm3, %v293_v30 }
 0x2a1   :  { %416 = shalt.err (!%p413_p12)
}
 0x2a2   :  { %s417_s15 = scalar_lea.hbm %s548_s7, 32 }
 0x2a3   :  { %p418_p13 = scmp.ne.s32.totalorder %s548_s7, %s417_s15  ;;  %p421_p0 = scmp.lt.u32.totalorder %s417_s15, %s548_s7 }
 0x2a5   :  { %p423_p1 = pnand %p421_p0, %p418_p13 }
 0x2a7   :  { %426 = shalt.err (!%p423_p1)
}
 0x2a8   :  { %307 = dma.vmem_to_hbm [thread:$0]  %s305_s13, 32, %s548_s7, [#allocation4]  }
 0x2a9   :  { %429 = dma.done.wait [#allocation4], 32  }
 0x2aa   :  { %430 = vsyncadd [#allocation4], 4294967264 }
 0x2ab   :  { %311 = vsyncpa [#allocation3], 1 }
 0x2ac   :  { %312 = vsyncpa [#allocation4], 1 }

</bundles_post_ra>
